<compile_context>
chip_gen: v7x
topology: tpu7x:2x2x1
jax: 0.10.0
libtpu: 0.0.40
codegen_flags: <defaults>
</compile_context>

<pallas_src>
import functools

import jax
import jax.numpy as jnp
from jax.experimental import pallas as pl
from jax.experimental.pallas import tpu as pltpu

EPS = 1e-5   # PyTorch BatchNorm2d default eps


# ----------------------------------------------------------------- kernels ---

def _pointwise_kernel(x_ref, w_ref, b_ref, o_ref, *, relu):
    # x_ref: (1, Ci, tn) bf16 ; w_ref: (Co, Ci) bf16 ; b_ref: (Co, 1) f32
    y = jnp.dot(w_ref[...], x_ref[0],
                preferred_element_type=jnp.float32) + b_ref[...]
    if relu:
        y = jnp.maximum(y, 0.0)
    o_ref[0] = y.astype(o_ref.dtype)


def _branch_conv_kernel(x_ref, row_ref, col_ref, w_ref, b_ref, o_ref, gap_ref,
                        *, K, pad, H, W, relu=True):
    # One full spatial plane per batch element.
    #   x_ref:  (1, Ci, N) bf16       (N = H*W)
    #   row/col:(1, N)     int32      (output-pixel row / col index)
    #   w_ref:  (K*K, Co, Ci) bf16    (BN-folded dense taps)
    #   b_ref:  (Co, 1) f32
    # Taps are generated with lane rolls (XLU) + boundary masks, accumulated
    # in an f32 register tile (unrolled loop -> deep MXU pipeline, no VMEM
    # scratch RMW, no T grid axis).
    x = x_ref[0]
    row = row_ref[...]
    col = col_ref[...]
    n = x.shape[-1]
    co = w_ref.shape[1]

    acc = jnp.zeros((co, n), jnp.float32)
    t = 0
    for ky in range(K):
        for kx in range(K):
            dy = ky - pad
            dx = kx - pad
            shift = (-(dy * W + dx)) % n
            x_t = pltpu.roll(x, shift, 1) if shift else x
            mask = ((row >= -dy) & (row < H - dy) &
                    (col >= -dx) & (col < W - dx))
            x_t = jnp.where(mask, x_t, jnp.zeros_like(x_t))
            acc = acc + jnp.dot(w_ref[t], x_t,
                                preferred_element_type=jnp.float32)
            t += 1

    y = acc + b_ref[...]
    if relu:
        y = jnp.maximum(y, 0.0)
    o_ref[0] = y.astype(o_ref.dtype)
    # per-branch global-average-pool contribution (sum; divided by N outside)
    gap_ref[0] = jnp.sum(y, axis=-1, keepdims=True)


def _sk_attn_kernel(s_ref, fcwT_ref, fcb_ref, fcswT_ref, fcsb_ref, o_ref,
                    *, num_branches):
    # s_ref: (B, C) f32 pooled features; tiny fc -> fcs -> softmax over M.
    s = s_ref[...]
    z = jnp.dot(s, fcwT_ref[...],
                preferred_element_type=jnp.float32) + fcb_ref[...]      # (B, d)
    logits = [jnp.dot(z, fcswT_ref[m],
                      preferred_element_type=jnp.float32) + fcsb_ref[m]
              for m in range(num_branches)]                              # (B, C)
    mx = logits[0]
    for m in range(1, num_branches):
        mx = jnp.maximum(mx, logits[m])
    exps = [jnp.exp(l - mx) for l in logits]
    den = exps[0]
    for m in range(1, num_branches):
        den = den + exps[m]
    inv = pl.reciprocal(den, approx=True)                                # EUP
    for m in range(num_branches):
        o_ref[m] = exps[m] * inv                                         # (B, C)


def _head_kernel(*args, num_branches, has_projection):
    # args: fea_0..fea_{M-1} (1, Cmid, tn) bf16, att (1, M, Cmid, 1) f32,
    #       res (1, Cres, tn) bf16|f32, w2 (Cout, Cmid) bf16,
    #       [ws (Cout, Cres) bf16], bias (Cout, 1) f32, out (1, Cout, tn) f32
    fea_refs = args[:num_branches]
    i = num_branches
    att_ref = args[i]; i += 1
    res_ref = args[i]; i += 1
    w2_ref = args[i]; i += 1
    ws_ref = None
    if has_projection:
        ws_ref = args[i]; i += 1
    b_ref = args[i]; i += 1
    o_ref = args[i]

    # weighted branch combine (fea_v) stays in VMEM/registers only
    fea_v = att_ref[0, 0] * fea_refs[0][0].astype(jnp.float32)
    for m in range(1, num_branches):
        fea_v = fea_v + att_ref[0, m] * fea_refs[m][0].astype(jnp.float32)

    y = jnp.dot(w2_ref[...], fea_v.astype(jnp.bfloat16),
                preferred_element_type=jnp.float32) + b_ref[...]
    if has_projection:
        y = y + jnp.dot(ws_ref[...], res_ref[0],
                        preferred_element_type=jnp.float32)
    else:
        y = y + res_ref[0]          # identity shortcut stays in f32
    o_ref[0] = y.astype(o_ref.dtype)


# -------------------------------------------------------- pallas_call wrappers

def _pick_n_tile(n, bytes_per_col, batch, *, min_parallel_blocks=8,
                 vmem_block_budget=8 << 20):
    """VMEM- and parallelism-aware lane tile.

    Largest tn dividing n (multiple of 128, or full n) whose double-buffered
    input+output blocks fit a conservative budget (safe for v7x's 64 MiB);
    shrink further while possible so batch * (n // tn) gives enough parallel
    grid blocks to feed both v7x TensorCores.
    """
    if n % 128 != 0:
        return n  # TODO(synk): pad N to a lane multiple for odd spatial sizes.
    cands = sorted({t for t in (n, 16384, 8192, 4096, 2048, 1024, 512, 256, 128)
                    if t <= n and n % t == 0}, reverse=True)
    fitting = [t for t in cands if 2 * bytes_per_col * t <= vmem_block_budget]
    if not fitting:
        return cands[-1]
    for t in fitting:
        if batch * (n // t) >= min_parallel_blocks:
            return t
    return fitting[-1]


def _pointwise(x_bf, w_bf, bias, *, relu=False):
    B, Ci, N = x_bf.shape
    Co = w_bf.shape[0]
    tn = _pick_n_tile(N, Ci * 2 + Co * 2, B)
    cost = pl.CostEstimate(
        flops=2 * B * Co * Ci * N, transcendentals=0,
        bytes_accessed=int(x_bf.size) * 2 + int(w_bf.size) * 2 + B * Co * N * 2)
    return pl.pallas_call(
        functools.partial(_pointwise_kernel, relu=relu),
        out_shape=jax.ShapeDtypeStruct((B, Co, N), jnp.bfloat16),
        grid_spec=pl.GridSpec(
            grid=(B, N // tn),
            in_specs=[
                pl.BlockSpec((1, Ci, tn), lambda b, nt: (b, 0, nt)),
                pl.BlockSpec((Co, Ci), lambda b, nt: (0, 0)),
                pl.BlockSpec((Co, 1), lambda b, nt: (0, 0)),
            ],
            out_specs=pl.BlockSpec((1, Co, tn), lambda b, nt: (b, 0, nt)),
        ),
        compiler_params=pltpu.CompilerParams(
            dimension_semantics=("parallel", "parallel")),
        cost_estimate=cost,
    )(x_bf, w_bf, bias.reshape(Co, 1))


def _branch_conv(y1_bf, row_idx, col_idx, w_taps_bf, bias, *, K, pad, H, W):
    # TODO(synk): for very large H*W, tile the spatial axis with halo blocks
    # (overlapping Element-indexed windows) instead of one full plane / batch,
    # which would also give more parallel grid blocks for v7x.
    B, Ci, N = y1_bf.shape
    T, Co, _ = w_taps_bf.shape
    cost = pl.CostEstimate(
        flops=2 * B * T * Co * Ci * N, transcendentals=0,
        bytes_accessed=int(y1_bf.size) * 2 + int(w_taps_bf.size) * 2
        + B * Co * N * 2 + B * Co * 4)
    return pl.pallas_call(
        functools.partial(_branch_conv_kernel, K=K, pad=pad, H=H, W=W),
        out_shape=(jax.ShapeDtypeStruct((B, Co, N), jnp.bfloat16),
                   jax.ShapeDtypeStruct((B, Co, 1), jnp.float32)),
        grid_spec=pl.GridSpec(
            grid=(B,),
            in_specs=[
                pl.BlockSpec((1, Ci, N), lambda b: (b, 0, 0)),
                pl.BlockSpec((1, N), lambda b: (0, 0)),
                pl.BlockSpec((1, N), lambda b: (0, 0)),
                pl.BlockSpec((T, Co, Ci), lambda b: (0, 0, 0)),
                pl.BlockSpec((Co, 1), lambda b: (0, 0)),
            ],
            out_specs=(pl.BlockSpec((1, Co, N), lambda b: (b, 0, 0)),
                       pl.BlockSpec((1, Co, 1), lambda b: (b, 0, 0))),
        ),
        compiler_params=pltpu.CompilerParams(
            dimension_semantics=("parallel",),
            vmem_limit_bytes=48 * 1024 * 1024),
        cost_estimate=cost,
    )(y1_bf, row_idx, col_idx, w_taps_bf, bias.reshape(Co, 1))


def _sk_attention_weights(fea_s, fc_w, fc_b, fcs_w, fcs_b):
    # fea_s: (B, C) f32.  Tiny: stays f32 end-to-end.
    B, C = fea_s.shape
    d = fc_w.shape[0]
    M = fcs_w.shape[0]
    fc_wT = jnp.transpose(fc_w)                 # (C, d)
    fcs_wT = jnp.transpose(fcs_w, (0, 2, 1))    # (M, d, C)
    return pl.pallas_call(
        functools.partial(_sk_attn_kernel, num_branches=M),
        out_shape=jax.ShapeDtypeStruct((M, B, C), jnp.float32),
        grid_spec=pl.GridSpec(
            grid=(1,),
            in_specs=[
                pl.BlockSpec((B, C), lambda i: (0, 0)),
                pl.BlockSpec((C, d), lambda i: (0, 0)),
                pl.BlockSpec((1, d), lambda i: (0, 0)),
                pl.BlockSpec((M, d, C), lambda i: (0, 0, 0)),
                pl.BlockSpec((M, 1, C), lambda i: (0, 0, 0)),
            ],
            out_specs=pl.BlockSpec((M, B, C), lambda i: (0, 0, 0)),
        ),
        compiler_params=pltpu.CompilerParams(
            dimension_semantics=("arbitrary",)),
    )(fea_s, fc_wT, fc_b.reshape(1, d), fcs_wT, fcs_b.reshape(M, 1, C))


def _head(feas, att_b, res, w2_bf, ws_bf, bias):
    B, Cmid, N = feas[0].shape
    M = len(feas)
    Cout = w2_bf.shape[0]
    Cres = res.shape[1]
    has_projection = ws_bf is not None
    bytes_per_col = M * Cmid * 2 + Cres * res.dtype.itemsize + Cout * 4
    tn = _pick_n_tile(N, bytes_per_col, B)

    in_specs = [pl.BlockSpec((1, Cmid, tn), lambda b, nt: (b, 0, nt))
                for _ in range(M)]
    in_specs.append(pl.BlockSpec((1, M, Cmid, 1), lambda b, nt: (b, 0, 0, 0)))
    in_specs.append(pl.BlockSpec((1, Cres, tn), lambda b, nt: (b, 0, nt)))
    in_specs.append(pl.BlockSpec((Cout, Cmid), lambda b, nt: (0, 0)))
    args = list(feas) + [att_b, res, w2_bf]
    if has_projection:
        in_specs.append(pl.BlockSpec((Cout, Cres), lambda b, nt: (0, 0)))
        args.append(ws_bf)
    in_specs.append(pl.BlockSpec((Cout, 1), lambda b, nt: (0, 0)))
    args.append(bias.reshape(Cout, 1))

    flops = 2 * B * Cout * Cmid * N
    if has_projection:
        flops += 2 * B * Cout * Cres * N
    bytes_acc = sum(int(a.size) * a.dtype.itemsize for a in args) \
        + B * Cout * N * 4
    cost = pl.CostEstimate(flops=int(flops), transcendentals=0,
                           bytes_accessed=int(bytes_acc))

    return pl.pallas_call(
        functools.partial(_head_kernel, num_branches=M,
                          has_projection=has_projection),
        out_shape=jax.ShapeDtypeStruct((B, Cout, N), jnp.float32),
        grid_spec=pl.GridSpec(
            grid=(B, N // tn),
            in_specs=in_specs,
            out_specs=pl.BlockSpec((1, Cout, tn), lambda b, nt: (b, 0, nt)),
        ),
        compiler_params=pltpu.CompilerParams(
            dimension_semantics=("parallel", "parallel")),
        cost_estimate=cost,
    )(*args)


# ----------------------------------------------------------- wrapper helpers --

def _bn_scale_shift(gamma, beta, mean, var, eps=EPS):
    s = gamma / jnp.sqrt(var + eps)
    return s, beta - mean * s


def _expand_grouped_weight(w, groups):
    # (Co, Ci/G, K, K) grouped weight -> dense (Co, Ci, K, K) block-diagonal.
    # TODO(synk): keep the block-diagonal group structure (per-group matmuls)
    # instead of zero-expansion when C/G is large (>= 128).
    co, cig, kh, kw = w.shape
    ci = cig * groups
    cog = co // groups
    dense = jnp.zeros((co, ci, kh, kw), w.dtype)
    for g in range(groups):
        dense = dense.at[g * cog:(g + 1) * cog,
                         g * cig:(g + 1) * cig].set(w[g * cog:(g + 1) * cog])
    return dense


# --------------------------------------------------------------- full forward

def sk_unit_forward(x, params):
    """SKUnit forward (stride=1, eval-mode BN). x: (B, Cin, H, W) f32."""
    # TODO(synk): train-mode BatchNorm (batch statistics) and stride>1 branches
    # are not implemented; this matches inference semantics with running stats.
    B, Cin, H, W = x.shape
    N = H * W
    p = params
    M = len(p["branch_w"])
    G = p["groups"]

    x_flat = x.reshape(B, Cin, N)
    x_bf = x_flat.astype(jnp.bfloat16)   # cast once; all MXU operands are bf16

    # ---- stage A: 1x1 conv + BN (folded) -----------------------------------
    s1, t1 = _bn_scale_shift(*p["bn1"])
    w1_eff = (s1[:, None] * p["conv1_w"]).astype(jnp.bfloat16)
    b1_eff = s1 * p["conv1_b"] + t1
    y1 = _pointwise(x_bf, w1_eff, b1_eff, relu=False)      # bf16 (B, Cmid, N)
    Cmid = y1.shape[1]

    # flattened-spatial row/col indices for in-kernel tap boundary masks
    n_idx = jnp.arange(N, dtype=jnp.int32)
    row_idx = (n_idx // W).reshape(1, N)
    col_idx = (n_idx % W).reshape(1, N)

    # ---- stage B: SKConv branches (grouped KxK conv + BN + ReLU, + GAP) -----
    feas, gaps = [], []
    for i in range(M):
        k = 3 + 2 * i
        pad = 1 + i
        sb, tb = _bn_scale_shift(*p["branch_bn"][i])
        w_dense = _expand_grouped_weight(p["branch_w"][i], G)
        w_dense = sb[:, None, None, None] * w_dense
        w_taps = jnp.transpose(w_dense, (2, 3, 0, 1)).reshape(k * k, Cmid, Cmid)
        b_eff = sb * p["branch_b"][i] + tb
        fea_i, gap_i = _branch_conv(y1, row_idx, col_idx,
                                    w_taps.astype(jnp.bfloat16), b_eff,
                                    K=k, pad=pad, H=H, W=W)
        feas.append(fea_i)
        gaps.append(gap_i)

    # ---- stage C: SK attention weights (tiny: B*M*C elements) --------------
    gap_sum = gaps[0]
    for g in gaps[1:]:
        gap_sum = gap_sum + g
    fea_s = gap_sum[:, :, 0] * (1.0 / N)                    # (B, Cmid) f32
    att = _sk_attention_weights(fea_s, p["fc_w"], p["fc_b"],
                                jnp.stack(p["fcs_w"]), jnp.stack(p["fcs_b"]))
    att_b = jnp.transpose(att, (1, 0, 2))[..., None]        # (B, M, Cmid, 1)

    # ---- stage D: combine + BN -> 1x1 conv -> BN head + shortcut + residual -
    sm_, tm_ = _bn_scale_shift(*p["bn_mid"])
    s2, t2 = _bn_scale_shift(*p["bn2"])
    w2_eff = s2[:, None] * p["conv2_w"] * sm_[None, :]
    b2_eff = s2 * (p["conv2_w"] @ tm_ + p["conv2_b"]) + t2
    Cout = w2_eff.shape[0]

    if p["shortcut_w"] is not None:
        ss, ts = _bn_scale_shift(*p["shortcut_bn"])
        ws_eff = (ss[:, None] * p["shortcut_w"]).astype(jnp.bfloat16)
        bias = b2_eff + (ss * p["shortcut_b"] + ts)
        res = x_bf
    else:   # identity shortcut: keep the residual in f32, no eye matmul
        ws_eff = None
        bias = b2_eff
        res = x_flat

    out = _head(feas, att_b, res, w2_eff.astype(jnp.bfloat16), ws_eff, bias)
    return out.reshape(B, Cout, H, W)


# ------------------------------------------------------ pure-JAX reference ---

def sk_unit_reference(x, params):
    p = params
    M = len(p["branch_w"])
    G = p["groups"]

    def bn(h, bnp):
        g, b, mean, var = bnp
        s = g / jnp.sqrt(var + EPS)
        return h * s[None, :, None, None] + (b - mean * s)[None, :, None, None]

    def conv1x1(h, w, b):
        return jnp.einsum("oc,bchw->bohw", w, h) + b[None, :, None, None]

    def gconv(h, w, b, pad):
        out = jax.lax.conv_general_dilated(
            h, w, window_strides=(1, 1),
            padding=((pad, pad), (pad, pad)),
            dimension_numbers=("NCHW", "OIHW", "NCHW"),
            feature_group_count=G)
        return out + b[None, :, None, None]

    y1 = bn(conv1x1(x, p["conv1_w"], p["conv1_b"]), p["bn1"])

    feas = []
    for i in range(M):
        f = gconv(y1, p["branch_w"][i], p["branch_b"][i], 1 + i)
        feas.append(jax.nn.relu(bn(f, p["branch_bn"][i])))
    feas = jnp.stack(feas, axis=1)                     # (B, M, C, H, W)

    fea_u = jnp.sum(feas, axis=1)
    fea_s = fea_u.mean(axis=(-2, -1))                  # (B, C)
    fea_z = fea_s @ p["fc_w"].T + p["fc_b"]            # (B, d)
    att = jnp.stack([fea_z @ p["fcs_w"][i].T + p["fcs_b"][i] for i in range(M)],
                    axis=1)                            # (B, M, C)
    att = jax.nn.softmax(att, axis=1)
    fea_v = jnp.sum(feas * att[:, :, :, None, None], axis=1)

    head = bn(conv1x1(bn(fea_v, p["bn_mid"]), p["conv2_w"], p["conv2_b"]),
              p["bn2"])
    if p["shortcut_w"] is not None:
        sc = bn(conv1x1(x, p["shortcut_w"], p["shortcut_b"]), p["shortcut_bn"])
    else:
        sc = x
    return head + sc


# --------------------------------------------------------- parameter builder -

def make_params(key, in_features, out_features, M, G, r, L, mid_features=None):
    if mid_features is None:
        mid_features = out_features // 2
    d = max(mid_features // r, L)
    keys = iter(jax.random.split(key, 64))

    def nrm(shape, fan_in):
        return (jax.random.normal(next(keys), shape, jnp.float32)
                / jnp.sqrt(float(fan_in)))

    def bn_params(c):
        return (1.0 + 0.3 * jax.random.normal(next(keys), (c,), jnp.float32),
                0.1 * jax.random.normal(next(keys), (c,), jnp.float32),
                0.1 * jax.random.normal(next(keys), (c,), jnp.float32),
                0.5 + jax.random.uniform(next(keys), (c,), jnp.float32))

    p = dict(groups=G)
    p["conv1_w"] = nrm((mid_features, in_features), in_features)
    p["conv1_b"] = 0.1 * jax.random.normal(next(keys), (mid_features,), jnp.float32)
    p["bn1"] = bn_params(mid_features)

    p["branch_w"], p["branch_b"], p["branch_bn"] = [], [], []
    for i in range(M):
        k = 3 + 2 * i
        fan_in = (mid_features // G) * k * k
        p["branch_w"].append(nrm((mid_features, mid_features // G, k, k), fan_in))
        p["branch_b"].append(0.1 * jax.random.normal(next(keys), (mid_features,),
                                                     jnp.float32))
        p["branch_bn"].append(bn_params(mid_features))

    p["bn_mid"] = bn_params(mid_features)
    p["conv2_w"] = nrm((out_features, mid_features), mid_features)
    p["conv2_b"] = 0.1 * jax.random.normal(next(keys), (out_features,), jnp.float32)
    p["bn2"] = bn_params(out_features)

    p["fc_w"] = nrm((d, mid_features), mid_features)
    p["fc_b"] = 0.1 * jax.random.normal(next(keys), (d,), jnp.float32)
    p["fcs_w"] = [nrm((mid_features, d), d) for _ in range(M)]
    p["fcs_b"] = [0.1 * jax.random.normal(next(keys), (mid_features,), jnp.float32)
                  for _ in range(M)]

    if in_features != out_features:
        p["shortcut_w"] = nrm((out_features, in_features), in_features)
        p["shortcut_b"] = 0.1 * jax.random.normal(next(keys), (out_features,),
                                                  jnp.float32)
        p["shortcut_bn"] = bn_params(out_features)
    else:
        p["shortcut_w"] = None
        p["shortcut_b"] = None
        p["shortcut_bn"] = None
    return p


if __name__ == "__main__":
    key = jax.random.PRNGKey(0)
    k_x, k_p = jax.random.split(key)

    # SKUnit(in_features=32, out_features=64, WH=16, M=2, G=4, r=2, L=16)
    B, in_features, out_features = 2, 32, 64
    H = W = 16
    M, G, r, L = 2, 4, 2, 16

    x = jax.random.normal(k_x, (B, in_features, H, W), dtype=jnp.float32)
    params = make_params(k_p, in_features, out_features, M, G, r, L)

    out = jax.block_until_ready(sk_unit_forward(x, params))
    ref = sk_unit_reference(x, params)

    assert out.shape == ref.shape == (B, out_features, H, W)
    err = float(jnp.max(jnp.abs(out - ref)))
    scale = float(jnp.max(jnp.abs(ref))) + 1e-6
    # bf16 MXU operands AND bf16 inter-stage intermediates (f32 accumulation)
    # vs the pure-f32 reference -> slightly looser tolerance than pure-bf16-matmul.
    assert err <= 0.04 * scale, (err, scale)
    print("KERNEL_OK")
</pallas_src>

<mosaic_0001>
module attributes {stable_mosaic.version = 11 : i64} {
  func.func @_pointwise_kernel(%arg0: i32, %arg1: i32, %arg2: memref<1x32x128xbf16, #tpu.memory_space<vmem>>, %arg3: memref<32x32xbf16, #tpu.memory_space<vmem>>, %arg4: memref<32x1xf32, #tpu.memory_space<vmem>>, %arg5: memref<1x32x128xbf16, #tpu.memory_space<vmem>>) attributes {dimension_semantics = [#tpu.dimension_semantics<parallel>, #tpu.dimension_semantics<parallel>], iteration_bounds = array<i64: 2, 2>, scalar_prefetch = 0 : i64, scratch_operands = 0 : i64, tpu.core_type = #tpu.core_type<tc>, window_params = [{transform_indices = @transform_0, window_bounds = array<i64: 1, 32, 128>}, {pipeline_mode = #tpu.pipeline_mode<synchronous>, transform_indices = @transform_1, window_bounds = array<i64: 32, 32>}, {pipeline_mode = #tpu.pipeline_mode<synchronous>, transform_indices = @transform_2, window_bounds = array<i64: 32, 1>}, {transform_indices = @transform_3, window_bounds = array<i64: 1, 32, 128>}]} {
    %c0 = arith.constant 0 : index
    %c0_0 = arith.constant 0 : index
    %0 = vector.load %arg3[%c0, %c0_0] : memref<32x32xbf16, #tpu.memory_space<vmem>>, vector<32x32xbf16>
    %c0_1 = arith.constant 0 : index
    %c0_2 = arith.constant 0 : index
    %c0_3 = arith.constant 0 : index
    %1 = vector.load %arg2[%c0_1, %c0_2, %c0_3] : memref<1x32x128xbf16, #tpu.memory_space<vmem>>, vector<1x32x128xbf16>
    %2 = vector.shape_cast %1 : vector<1x32x128xbf16> to vector<32x128xbf16>
    %cst = arith.constant dense<0.000000e+00> : vector<32x128xf32>
    %3 = tpu.matmul %0, %2, %cst {dimension_numbers = #tpu.dot_dimension_numbers<[1], [0], [0], [1], [0, 0, 1, 1], [], []>} : vector<32x32xbf16>, vector<32x128xbf16>, vector<32x128xf32> -> vector<32x128xf32>
    %c0_4 = arith.constant 0 : index
    %c0_5 = arith.constant 0 : index
    %4 = vector.load %arg4[%c0_4, %c0_5] : memref<32x1xf32, #tpu.memory_space<vmem>>, vector<32x1xf32>
    %5 = vector.broadcast %4 : vector<32x1xf32> to vector<32x128xf32>
    %6 = arith.addf %3, %5 : vector<32x128xf32>
    %7 = arith.truncf %6 : vector<32x128xf32> to vector<32x128xbf16>
    %c0_6 = arith.constant 0 : index
    %c0_7 = arith.constant 0 : index
    %c0_8 = arith.constant 0 : index
    %8 = vector.load %arg5[%c0_6, %c0_7, %c0_8] : memref<1x32x128xbf16, #tpu.memory_space<vmem>>, vector<1x32x128xbf16>
    %9 = vector.shape_cast %8 : vector<1x32x128xbf16> to vector<32x128xbf16>
    %10 = vector.shape_cast %7 : vector<32x128xbf16> to vector<1x32x128xbf16>
    tpu.vector_store %arg5[%c0_6, %c0_7, %c0_8], %10 {strides = array<i32>} : memref<1x32x128xbf16, #tpu.memory_space<vmem>>, vector<1x32x128xbf16>,
    return
  }
  func.func @transform_0(%arg0: i32, %arg1: i32) -> (i32, i32, i32) {
    %c0_i32 = arith.constant 0 : i32
    %c0_i32_0 = arith.constant 0 : i32
    return %arg0, %c0_i32, %arg1 : i32, i32, i32
  }
  func.func @transform_1(%arg0: i32, %arg1: i32) -> (i32, i32) {
    %c0_i32 = arith.constant 0 : i32
    %c0_i32_0 = arith.constant 0 : i32
    %c0_i32_1 = arith.constant 0 : i32
    return %c0_i32, %c0_i32_0 : i32, i32
  }
  func.func @transform_2(%arg0: i32, %arg1: i32) -> (i32, i32) {
    %c0_i32 = arith.constant 0 : i32
    %c0_i32_0 = arith.constant 0 : i32
    %c0_i32_1 = arith.constant 0 : i32
    return %c0_i32, %c0_i32_0 : i32, i32
  }
  func.func @transform_3(%arg0: i32, %arg1: i32) -> (i32, i32, i32) {
    %c0_i32 = arith.constant 0 : i32
    %c0_i32_0 = arith.constant 0 : i32
    return %arg0, %c0_i32, %arg1 : i32, i32, i32
  }
}

</mosaic_0001>

<bundles_post_ra>
// kernel: tpu_custom_call.1
= control target key start
LH: loop header
LB: loop body
LE: loop exit
PB: predicated region body
PF: predicated region fallthrough
CT: control target
= control target key end

     0   :  { %8 = vsyncpa [#allocation3], 0  ;;  %s961_s0 = inlined_call_operand.hbm [shape: bf16[2,32,256], index: 0, kind: input, shape index: {}]   ;;  %s962_s1 = inlined_call_operand.vmem [shape: bf16[32,32], index: 1, kind: input, shape index: {}]   ;;  %s963_s2 = inlined_call_operand.vmem [shape: f32[32,1], index: 2, kind: input, shape index: {}]   ;;  %s964_s3 = inlined_call_operand.hbm [shape: bf16[2,32,256], index: 3, kind: output, shape index: {}]  }
   0x1   :  { %10 = vsyncpa [#allocation3 + $0x1], 0 }
   0x2   :  { %11 = vsyncpa [#allocation4], 0 }
   0x3   :  { %13 = vsyncpa [#allocation4 + $0x1], 0  ;;  %s742_s12 = smov 0   ;;  %s744_s13 = smov 0  }
   0x4   :  { %s746_s14 = smov 0   ;;  %s748_s15 = smov 0  }
   0x5   :  { %s750_s16 = smov 0   ;;  %s752_s17 = smov 0  }
   0x6   :  { %s754_s18 = smov 0   ;;  %s756_s19 = smov 0  }
   0x7 LB: > { %s440_s20 = sadd.s32 4294967295, %s711_s19   ;;  %s441_s21 = sadd.s32 4294967294, %s711_s19   ;;  %s711_s19 = sphi %s756_s19, %s19_s19   ;;  %s707_s18 = sphi %s754_s18, %s982_s18   ;;  %s703_s17 = sphi %s752_s17, %s981_s17   ;;  %s699_s16 = sphi %s750_s16, %s980_s16   ;;  %s695_s15 = sphi %s748_s15, %s979_s15   ;;  %s691_s14 = sphi %s746_s14, %s978_s14   ;;  %s687_s13 = sphi %s744_s13, %s977_s13   ;;  %s683_s12 = sphi %s742_s12, %s976_s12  }
   0x8   : > { %s28_s22 = sadd.s32 1, %s703_s17  ;;  %s31_s23 = sadd.s32 1, %s707_s18 }
   0x9   : > { %p29_p0 = scmp.ge.s32.totalorder %s28_s22, 2  ;;  %s40_s24 = sadd.s32 1, %s691_s14 }
   0xa   : > { %p47_p1 = scmp.ne.s32.totalorder %s691_s14, %s687_s13  ;;  %p48_p2 = scmp.eq.s32.totalorder %s711_s19, 0 }
   0xb   : > { %s984_s22 = smov (%p29_p0, %s28_s22), 0  ;;  %s986_s23 = smov (!%p29_p0, %s31_s23), %s707_s18 }
   0xc   : > { %s36_s25 = ssub.s32 %s703_s17, %s984_s22  ;;  %p795_p3 = por %p48_p2, %p47_p1 }
   0xd   : > { %p33_p4 = scmp.ge.s32.totalorder %s986_s23, 2  ;;  %p53_p5 = scmp.ne.s32.totalorder %s687_s13, %s683_s12 }
   0xe   : > { %p54_p6 = scmp.eq.s32.totalorder %s440_s20, 0  ;;  %p121_p7 = scmp.eq.s32.totalorder %s440_s20, 3 }
   0xf   : > { %s988_s23 = smov (%p33_p4, %s986_s23), 0  ;;  %p127_p10 = scmp.eq.s32.totalorder %s441_s21, 3 }
  0x10   : > { %968 = sst [smem:[#allocation8_spill]] %s988_s23  ;;  %p803_p8 = por %p54_p6, %p53_p5 }
  0x11   : > { %p807_p9 = por %p121_p7, %p47_p1  ;;  %s35_s29 = ssub.s32 %s707_s18, %s988_s23 }
  0x12   : > { %s37_s30 = sor.u32 %s36_s25, %s35_s29  ;;  %p813_p12 = por %p127_p10, %p53_p5 }
  0x13   : > { %s970_s28 = scalar_select %p807_p9, 1, 0 }
  0x14   : > { %p38_p11 = scmp.eq.s32.totalorder %s37_s30, 0  ;;  %p504_p13 = scmp.lt.s32.totalorder %s711_s19, 4 }
  0x15   : > { %s971_s4 = scalar_select %p813_p12, 1, 0 }
  0x16   : > { %s153_s5 = sand.u32 1, %s691_s14   ;;  %s445_s8 = sshll.u32 %s707_s18, 3 }
  0x17   : > { %s820_s6 = scalar_select %p38_p11, %s691_s14, %s40_s24  }
  0x18   : > { %s444_s7 = sshll.u32 %s153_s5, 4  ;;  %s162_s9 = sadd.s32 %s703_s17, %s445_s8 }
  0x19   : > { %s157_s10 = scalar_lea.vmem [#allocation2], %s444_s7  ;;  %s446_s20 = sshll.u32 %s162_s9, 6 }
  0x1a   : > { %s165_s11 = sshll.u32 %s157_s10, 4  ;;  %s829_s25 = scalar_lea.hbm %s961_s0, %s446_s20  ;;  %s824_s11 = int_to_ptr.vmem [resolvable:$true] %s165_s11 }
  0x1b   : > { %p833_p0 = pnand %p504_p13, %p795_p3  ;;  %s837_s29 = scalar_lea.sflag [#allocation3], %s153_s5 }
  0x1c   : > { %s583_s30 = scalar_lea.hbm %s829_s25, 256  ;;  %s588_s7 = scalar_lea.hbm %s961_s0, 1024 }
  0x1d   : > { %p584_p1 = scmp.ne.s32.totalorder %s829_s25, %s583_s30  ;;  %p585_p2 = pneg %p833_p0 }
  0x1e   : > { %p589_p3 = scmp.lt.u32.totalorder %s829_s25, %s961_s0  ;;  %p590_p6 = scmp.lt.u32.totalorder %s588_s7, %s583_s30 }
  0x1f   : > { %p586_p4 = pnand %p585_p2, %p584_p1  ;;  %p592_p10 = scmp.lt.u32.totalorder %s583_s30, %s829_s25 }
  0x20   : > { %p591_p7 = por %p590_p6, %p589_p3 }
  0x21   : > { %p587_p5 = pneg %p586_p4 }
  0x22   : > { %p593_p11 = por %p592_p10, %p591_p7 }
  0x24   : > { %p594_p13 = pnand %p593_p11, %p587_p5 }
  0x26   : > { %597 = shalt.err (!%p594_p13)
}
  0x27   : > { %s598_s5 = scalar_lea.vmem %s824_s11, 256  ;;  %s713_s10 = smov [#allocation2]  }
  0x28   : > { %p599_p1 = scmp.ne.s32.totalorder %s824_s11, %s598_s5  ;;  %s603_s20 = sshll.u32 %s713_s10, 4  ;;  %s604_s20 = int_to_ptr.vmem [resolvable:$false] %s603_s20 }
  0x29   : > { %s605_s21 = scalar_lea.vmem %s604_s20, 512  ;;  %p606_p9 = scmp.lt.s32.totalorder %s824_s11, %s604_s20 }
  0x2a   : > { %p601_p4 = pnand %p599_p1, %p585_p2  ;;  %p607_p3 = scmp.lt.s32.totalorder %s605_s21, %s598_s5 }
  0x2c   : > { %p602_p12 = pneg %p601_p4  ;;  %p608_p6 = por %p607_p3, %p606_p9 }
  0x2e   : > { %p609_p7 = pnand %p608_p6, %p602_p12 }
  0x30   : > { %612 = shalt.err (!%p609_p7)
}
  0x31   : > { %s714_s30 = smov 128   ;;  %s715_s23 = smov 64  }
  0x32   : > { %s716_s26 = smov 4   ;;  %p447_p2 = scmp.ge.s32.totalorder %s711_s19, 1 }
  0x33   : > { %499 = dma.hbm_to_vmem [thread:$0]  (!%p833_p0), %s829_s25, 256, %s824_s11, %s837_s29, %s714_s30, %s715_s23, %s716_s26  }
  0x34   : > { %p173_p5 = scmp.lt.s32.totalorder %s711_s19, 5 }
  0x36   : > { %p174_p10 = pnand %p447_p2, %p173_p5 }
  0x37   : > { %s868_s7 = sand.u32 (!%p174_p10), 1, %s687_s13  }
  0x38   : > { %177 = sbr.rel (%p174_p10) target bundleno = 309 (0x135), region = 32  ;;  %s448_s8 = sshll.u32 (!%p174_p10), %s868_s7, 4 }
  0x39   : > { %s180_s9 = scalar_lea.sflag (!%p174_p10), [#allocation3], %s868_s7  ;;  %s183_s5 = scalar_lea.vmem (!%p174_p10), [#allocation2], %s448_s8 }
  0x3f   : > { %674 = dma.done.wait (%p803_p8), %s180_s9, 256  }
  0x40   : > { %676 = vsyncadd (%p803_p8), %s180_s9, 4294967040  ;;  %v717_v0 = vmov 0   ;;  %v579_v1 = vld [vmem:[%s183_s5] sm:$0xff]   ;;  %v580_v2 = vld [vmem:[%s183_s5 + $0x8] sm:$0xff]   ;;  %vm261_vm0 = vcmask 261120   ;;  %s461_s5 = sshll.u32 %s699_s16, 3 }
  0x41   : > { %578 = vset.pattern.permute.xlu1 %v717_v0  ;;  %577 = vset.pattern.permute.xlu0 %v717_v0  ;;  %v581_v3 = vld [vmem:[%s962_s1] sm:$0xff]   ;;  %v217_v4 = vld [vmem:[%s963_s2 + $0x10] sm:$0xff]  ;;  %v582_v6 = vld [vmem:[%s962_s1 + $0x8] sm:$0xff]   ;;  %s349_s11 = sadd.s32 %s695_s15, %s461_s5  ;;  %s205_s25 = scalar_lea.vmem [#allocation5], %s448_s8 }
  0x42   : > { %484 = vmatprep.subr.bf16.mxu0 %v579_v1  ;;  %488 = vmatprep.mubr.msk.bf16.mxu0 %vm261_vm0, %v581_v3  ;;  %v215_v5 = vld [vmem:[%s963_s2] sm:$0xff]  ;;  %v218_v7 = vld [vmem:[%s963_s2 + $0x18] sm:$0xff]  ;;  %v216_v8 = vld [vmem:[%s963_s2 + $0x8] sm:$0xff]  ;;  %s352_s24 = sshll.u32 %s205_s25, 4  ;;  %s462_s27 = sshll.u32 %s349_s11, 6  ;;  %s902_s24 = int_to_ptr.vmem [resolvable:$true] %s352_s24 }
  0x43   : > { %485 = vmatpush3.bf16.msra.mxu0 %v579_v1  ;;  %231 = vperm.xlu1 %578, %v217_v4   ;;  %s907_s8 = scalar_lea.hbm %s964_s3, %s462_s27  ;;  %s338_s29 = scalar_lea.sflag [#allocation4], %s868_s7 }
  0x44   : > { %486 = vmatprep.subr.bf16.mxu0 %v580_v2  ;;  %221 = vperm.xlu0 %577, %v215_v5   ;;  %s613_s10 = scalar_lea.vmem %s902_s24, 256  ;;  %p973_p9 = scmp.ne.s32.totalorder %s970_s28, 0 }
  0x45   : > { %p614_p8 = scmp.ne.s32.totalorder %s902_s24, %s613_s10  ;;  %s718_s20 = smov [#allocation5]  }
  0x46   : > { %s617_s21 = sshll.u32 %s718_s20, 4  ;;  %s618_s21 = int_to_ptr.vmem [resolvable:$false] %s617_s21 }
  0x47   : > { %487 = vmatpush3.bf16.msra.mxu0 %v580_v2  ;;  %236 = vperm.xlu1 %578, %v218_v7   ;;  %p615_p12 = pnand %p614_p8, %p973_p9  ;;  %s619_s30 = scalar_lea.vmem %s618_s21, 512 }
  0x48   : > { %226 = vperm.xlu0 %577, %v216_v8   ;;  %p620_p11 = scmp.lt.s32.totalorder %s902_s24, %s618_s21  ;;  %p621_p13 = scmp.lt.s32.totalorder %s619_s30, %s613_s10 }
  0x49   : > { %p616_p0 = pneg %p615_p12 }
  0x4a   : > { %489 = vmatmul.mubr.msk.bf16.vlgmr.msra.gmra.mrb[0].mxu0 %vm261_vm0, %v582_v6  ;;  %p622_p1 = por %p621_p13, %p620_p11 }
  0x4c   : > { %p623_p4 = pnand %p622_p1, %p616_p0 }
  0xc2   : > { %v232_v9 = vpop.permute.xlu1 %231 }
  0xc3   : > { %v222_v10 = vpop.permute.xlu0 %221 }
  0xc6   : > { %v237_v13 = vpop.permute.xlu1 %236 }
  0xc7   : > { %v227_v15 = vpop.permute.xlu0 %226 }
 0x11d   : > { %v490_v11 = vpop.f32.mrb[0].mxu0 }
 0x11e   : > { %v302_v12 = vpop.f32.mrb[1].mxu0  ;;  %v311_v16 = vadd.f32 %v490_v11, %v232_v9 }
 0x11f   : > { %v491_v14 = vpop.f32.mrb[2].mxu0  ;;  %v303_v19 = vadd.f32 %v302_v12, %v222_v10 }
 0x120   : > { %v314_v17 = vadd.f32 %v491_v14, %v237_v13  ;;  %v305_v18 = vpop.f32.mrb[3].mxu0 }
 0x121   : > { %v306_v20 = vadd.f32 %v305_v18, %v227_v15 }
 0x122   : > { %v477_v21 = vpack.c.bf16 %v314_v17, %v311_v16 }
 0x123   : > { %v472_v22 = vpack.c.bf16 %v306_v20, %v303_v19 }
 0x124   : > { %479 = vst [vmem:[%s205_s25 + $0x8] sm:$0xff] %v477_v21  }
 0x125   : > { %473 = vst [vmem:[%s205_s25] sm:$0xff] %v472_v22  }
 0x126   : > { %626 = shalt.err (!%p623_p4)
}
 0x127   : > { %s627_s23 = scalar_lea.hbm %s907_s8, 256  ;;  %s631_s5 = scalar_lea.hbm %s964_s3, 1024 }
 0x128   : > { %p628_p3 = scmp.ne.s32.totalorder %s907_s8, %s627_s23  ;;  %p632_p2 = scmp.lt.u32.totalorder %s907_s8, %s964_s3 }
 0x129   : > { %p633_p5 = scmp.lt.u32.totalorder %s631_s5, %s627_s23  ;;  %p635_p8 = scmp.lt.u32.totalorder %s627_s23, %s907_s8 }
 0x12a   : > { %p629_p6 = pnand %p628_p3, %p973_p9 }
 0x12b   : > { %p634_p10 = por %p633_p5, %p632_p2 }
 0x12c   : > { %p630_p7 = pneg %p629_p6 }
 0x12d   : > { %p636_p12 = por %p635_p8, %p634_p10 }
 0x12f   : > { %p637_p0 = pnand %p636_p12, %p630_p7 }
 0x131   : > { %640 = shalt.err (!%p637_p0)
}
 0x132   : > { %s719_s27 = smov 64   ;;  %s720_s15 = smov 128  }
 0x133   : > { %s721_s16 = smov 4  }
 0x134   : > { %494 = dma.vmem_to_hbm [thread:$0]  (%p973_p9), %s902_s24, 256, %s907_s8, %s338_s29, %s719_s27, %s720_s15, %s721_s16  }
 0x135 PF: > { %p505_p11 = scmp.ge.s32.totalorder %s711_s19, 2  ;;  %s367_s10 = sand.u32 1, %s683_s12  }
 0x136   : > { %p974_p13 = scmp.ne.s32.totalorder %s971_s4, 0  ;;  %s368_s20 = scalar_lea.sflag [#allocation4], %s367_s10 }
 0x138   : > { %p501_p1 = pnand %p505_p11, %p974_p13 }
 0x13a   : > { %678 = dma.done.wait (!%p501_p1), %s368_s20, 256  }
 0x13b   : > { %680 = vsyncadd (!%p501_p1), %s368_s20, 4294967040  ;;  %s19_s19 = sadd.s32 1, %s711_s19   ;;  %s975_s28 = sld [smem:[#allocation8_spill]] }
 0x13c   : > { %p16_p4 = scmp.ge.s32.totalorder %s19_s19, 6   ;;  %s976_s12 = smov %s687_s13 }
 0x13d   : > { %s977_s13 = smov %s691_s14  ;;  %s978_s14 = smov %s820_s6 }
 0x13e   : > { %s979_s15 = smov %s703_s17  ;;  %s980_s16 = smov %s707_s18 }
 0x13f   : > { %s981_s17 = smov %s984_s22  ;;  %18 = sbr.rel (!%p16_p4) target bundleno = 7 (0x7), region = 77 }
 0x141   : > { %s982_s18 = smov %s975_s28 }
 0x146   :  { %373 = vsyncpa [#allocation3], 1 }
 0x147   :  { %375 = vsyncpa [#allocation3 + $0x1], 1 }
 0x148   :  { %376 = vsyncpa [#allocation4], 1 }
 0x149   :  { %378 = vsyncpa [#allocation4 + $0x1], 1 }

</bundles_post_ra>
